<compile_context>
chip_gen: v6e
topology: v6e:2x2x1
jax: 0.10.0
libtpu: 0.0.40
codegen_flags: <defaults>
</compile_context>

<pallas_src>
import functools

import jax
import jax.numpy as jnp
from jax.experimental import pallas as pl
from jax.experimental.pallas import tpu as pltpu


def se_block_kernel(x_ref, w1_ref, w2_ref, o_ref, *, channels_last):
    # channels_last=True : x_ref/o_ref are (Bt, HW, C)  (C on the 128-lane axis)
    # channels_last=False: x_ref/o_ref are (Bt, C, HW)  (HW on the 128-lane axis)
    # w1_ref : (C, Cr)   first linear  (== PyTorch W1^T)
    # w2_ref : (Cr, C)   second linear (== PyTorch W2^T)
    x = x_ref[...].astype(jnp.float32)                 # upcast once (no-op for f32)

    spatial_axis = 1 if channels_last else 2
    # ---- squeeze: global average pool over the spatial axis (f32 accumulation) ----
    s = jnp.mean(x, axis=spatial_axis)                 # (Bt, C)

    # ---- excitation: Linear -> ReLU -> Linear -> Sigmoid (MXU, f32 accumulate) ----
    h = jnp.dot(s, w1_ref[...], preferred_element_type=jnp.float32)   # (Bt, Cr)
    h = jnp.maximum(h, 0.0)
    e = jnp.dot(h, w2_ref[...], preferred_element_type=jnp.float32)   # (Bt, C)
    e = jax.nn.sigmoid(e)

    # ---- scale: broadcast the per-channel gate over the spatial axis ----
    if channels_last:
        y = x * e[:, None, :]
    else:
        y = x * e[:, :, None]
    o_ref[...] = y.astype(o_ref.dtype)


def se_block(x, w1, w2, *, max_bt=8, vmem_budget_bytes=40 * (1 << 20)):
    """SEBlock forward.

    x : (B, C, H, W) float32/bf16
    w1: (C//r, C)  PyTorch nn.Linear(C, C//r, bias=False) weight
    w2: (C, C//r)  PyTorch nn.Linear(C//r, C, bias=False) weight
    """
    B, C, H, W = x.shape
    HW = H * W
    Cr = w1.shape[0]
    dtype = x.dtype
    itemsize = jnp.dtype(dtype).itemsize

    # Channels-last whenever C can occupy the lane axis densely (typical SE nets:
    # C = 128/256/512/1024, HW = 49/196/784/3136 which are NOT lane multiples).
    channels_last = C >= 128

    # Per-grid-step VMEM footprint: double-buffered input block + output block.
    def step_bytes(bt):
        return 4 * bt * C * HW * itemsize

    # Largest divisor of B (<= max_bt) whose blocks fit the budget. The budget is
    # chosen so it stays comfortably inside v7x's 64 MiB physical VMEM; v5e/v6e
    # (128 MiB) have even more headroom.
    bt = 1
    for d in range(1, max_bt + 1):
        if B % d == 0 and step_bytes(d) <= vmem_budget_bytes:
            bt = d

    # Pre-transpose weights once so the kernel does s @ W1^T, h @ W2^T directly.
    w1_t = w1.T  # (C, Cr)
    w2_t = w2.T  # (Cr, C)

    if channels_last:
        x_in = jnp.transpose(x.reshape(B, C, HW), (0, 2, 1))   # (B, HW, C)
        blk = (bt, HW, C)
    else:
        x_in = x.reshape(B, C, HW)                             # (B, C, HW)
        blk = (bt, C, HW)

    weight_bytes = (C * Cr + Cr * C) * jnp.dtype(w1.dtype).itemsize
    vmem_limit = int(
        min(96 * (1 << 20),
            max(32 * (1 << 20), step_bytes(bt) + 4 * weight_bytes + (2 << 20)))
    )

    kernel = functools.partial(se_block_kernel, channels_last=channels_last)

    out = pl.pallas_call(
        kernel,
        out_shape=jax.ShapeDtypeStruct(x_in.shape, dtype),
        grid_spec=pltpu.PrefetchScalarGridSpec(
            num_scalar_prefetch=0,
            grid=(B // bt,),
            in_specs=[
                pl.BlockSpec(blk, lambda b: (b, 0, 0)),
                pl.BlockSpec((C, Cr), lambda b: (0, 0)),   # tiny, stays resident
                pl.BlockSpec((Cr, C), lambda b: (0, 0)),
            ],
            out_specs=pl.BlockSpec(blk, lambda b: (b, 0, 0)),
        ),
        compiler_params=pltpu.CompilerParams(
            dimension_semantics=("parallel",),
            vmem_limit_bytes=vmem_limit,
        ),
    )(x_in, w1_t, w2_t)

    if channels_last:
        out = jnp.transpose(out, (0, 2, 1))
    return out.reshape(B, C, H, W)


def se_block_reference(x, w1, w2):
    s = jnp.mean(x, axis=(2, 3))                      # (B, C)
    h = jnp.maximum(s @ w1.T, 0.0)                    # (B, C//r)
    e = jax.nn.sigmoid(h @ w2.T)                      # (B, C)
    return x * e[:, :, None, None]


if __name__ == "__main__":
    key = jax.random.PRNGKey(0)

    def run_case(B, C, H, W, r, k):
        Cr = max(C // r, 1)
        kx, k1, k2 = jax.random.split(k, 3)
        x = jax.random.normal(kx, (B, C, H, W), dtype=jnp.float32)
        # PyTorch nn.Linear layout (out, in), bias=False per the module spec.
        w1 = jax.random.normal(k1, (Cr, C), dtype=jnp.float32) * 0.1
        w2 = jax.random.normal(k2, (C, Cr), dtype=jnp.float32) * 0.1

        y = jax.block_until_ready(se_block(x, w1, w2))
        y_ref = se_block_reference(x, w1, w2)
        assert y.shape == (B, C, H, W)
        assert jnp.allclose(y, y_ref, atol=1e-5, rtol=1e-5), (
            f"mismatch vs reference for shape {(B, C, H, W)}"
        )

    ka, kb = jax.random.split(key)
    # Case 1: small C (<128) -> channels-first path, Bt=2 images per grid step.
    run_case(2, 32, 16, 16, 16, ka)
    # Case 2: C=128, HW=49 (not a lane multiple) -> channels-last lane-dense path.
    run_case(4, 128, 7, 7, 16, kb)

    print("KERNEL_OK")
</pallas_src>

<mosaic_0001>
module attributes {stable_mosaic.version = 11 : i64} {
  func.func @se_block_kernel(%arg0: i32, %arg1: memref<2x32x256xf32, #tpu.memory_space<vmem>>, %arg2: memref<32x2xf32, #tpu.memory_space<vmem>>, %arg3: memref<2x32xf32, #tpu.memory_space<vmem>>, %arg4: memref<2x32x256xf32, #tpu.memory_space<vmem>>) attributes {dimension_semantics = [#tpu.dimension_semantics<parallel>], iteration_bounds = array<i64: 1>, scalar_prefetch = 0 : i64, scratch_operands = 0 : i64, tpu.core_type = #tpu.core_type<tc>, window_params = [{transform_indices = @transform_0, window_bounds = array<i64: 2, 32, 256>}, {pipeline_mode = #tpu.pipeline_mode<synchronous>, transform_indices = @transform_1, window_bounds = array<i64: 32, 2>}, {pipeline_mode = #tpu.pipeline_mode<synchronous>, transform_indices = @transform_2, window_bounds = array<i64: 2, 32>}, {transform_indices = @transform_3, window_bounds = array<i64: 2, 32, 256>}]} {
    %c0 = arith.constant 0 : index
    %c0_0 = arith.constant 0 : index
    %c0_1 = arith.constant 0 : index
    %0 = vector.load %arg1[%c0, %c0_0, %c0_1] : memref<2x32x256xf32, #tpu.memory_space<vmem>>, vector<2x32x256xf32>
    %cst = arith.constant dense<0.000000e+00> : vector<2x32xf32>
    %1 = vector.multi_reduction <add>, %0, %cst [2] : vector<2x32x256xf32> to vector<2x32xf32>
    %cst_2 = arith.constant 2.560000e+02 : f32
    %2 = vector.broadcast %cst_2 : f32 to vector<2x32xf32>
    %3 = arith.divf %1, %2 : vector<2x32xf32>
    %c0_3 = arith.constant 0 : index
    %c0_4 = arith.constant 0 : index
    %4 = vector.load %arg2[%c0_3, %c0_4] : memref<32x2xf32, #tpu.memory_space<vmem>>, vector<32x2xf32>
    %cst_5 = arith.constant dense<0.000000e+00> : vector<2x2xf32>
    %5 = tpu.matmul %3, %4, %cst_5 {dimension_numbers = #tpu.dot_dimension_numbers<[1], [0], [0], [1], [0, 0, 1, 1], [], []>} : vector<2x32xf32>, vector<32x2xf32>, vector<2x2xf32> -> vector<2x2xf32>
    %cst_6 = arith.constant 0.000000e+00 : f32
    %6 = vector.broadcast %cst_6 : f32 to vector<2x2xf32>
    %7 = arith.maximumf %5, %6 : vector<2x2xf32>
    %c0_7 = arith.constant 0 : index
    %c0_8 = arith.constant 0 : index
    %8 = vector.load %arg3[%c0_7, %c0_8] : memref<2x32xf32, #tpu.memory_space<vmem>>, vector<2x32xf32>
    %cst_9 = arith.constant dense<0.000000e+00> : vector<2x32xf32>
    %9 = tpu.matmul %7, %8, %cst_9 {dimension_numbers = #tpu.dot_dimension_numbers<[1], [0], [0], [1], [0, 0, 1, 1], [], []>} : vector<2x2xf32>, vector<2x32xf32>, vector<2x32xf32> -> vector<2x32xf32>
    %10 = arith.negf %9 : vector<2x32xf32>
    %11 = math.exp %10 : vector<2x32xf32>
    %cst_10 = arith.constant 1.000000e+00 : f32
    %12 = vector.broadcast %cst_10 : f32 to vector<2x32xf32>
    %13 = arith.addf %12, %11 : vector<2x32xf32>
    %14 = arith.divf %12, %13 : vector<2x32xf32>
    %15 = vector.shape_cast %14 : vector<2x32xf32> to vector<2x32x1xf32>
    %16 = vector.broadcast %15 : vector<2x32x1xf32> to vector<2x32x256xf32>
    %17 = arith.mulf %0, %16 : vector<2x32x256xf32>
    %c0_11 = arith.constant 0 : index
    %c0_12 = arith.constant 0 : index
    %c0_13 = arith.constant 0 : index
    %18 = vector.load %arg4[%c0_11, %c0_12, %c0_13] : memref<2x32x256xf32, #tpu.memory_space<vmem>>, vector<2x32x256xf32>
    tpu.vector_store %arg4[%c0_11, %c0_12, %c0_13], %17 {strides = array<i32>} : memref<2x32x256xf32, #tpu.memory_space<vmem>>, vector<2x32x256xf32>,
    return
  }
  func.func @transform_0(%arg0: i32) -> (i32, i32, i32) {
    %c0_i32 = arith.constant 0 : i32
    %c0_i32_0 = arith.constant 0 : i32
    %c0_i32_1 = arith.constant 0 : i32
    return %arg0, %c0_i32, %c0_i32_0 : i32, i32, i32
  }
  func.func @transform_1(%arg0: i32) -> (i32, i32) {
    %c0_i32 = arith.constant 0 : i32
    %c0_i32_0 = arith.constant 0 : i32
    %c0_i32_1 = arith.constant 0 : i32
    return %c0_i32, %c0_i32_0 : i32, i32
  }
  func.func @transform_2(%arg0: i32) -> (i32, i32) {
    %c0_i32 = arith.constant 0 : i32
    %c0_i32_0 = arith.constant 0 : i32
    %c0_i32_1 = arith.constant 0 : i32
    return %c0_i32, %c0_i32_0 : i32, i32
  }
  func.func @transform_3(%arg0: i32) -> (i32, i32, i32) {
    %c0_i32 = arith.constant 0 : i32
    %c0_i32_0 = arith.constant 0 : i32
    %c0_i32_1 = arith.constant 0 : i32
    return %arg0, %c0_i32, %c0_i32_0 : i32, i32, i32
  }
}

</mosaic_0001>

<bundles_post_ra>
// kernel: tpu_custom_call.1
= control target key start
LH: loop header
LB: loop body
LE: loop exit
PB: predicated region body
PF: predicated region fallthrough
CT: control target
= control target key end

     0   :  { %8 = vsyncpa [#allocation3], 0  ;;  %s582_s0 = inlined_call_operand.hbm [shape: f32[2,32,256], index: 0, kind: input, shape index: {}]   ;;  %s583_s1 = inlined_call_operand.vmem [shape: f32[32,2], index: 1, kind: input, shape index: {}]   ;;  %s584_s2 = inlined_call_operand.vmem [shape: f32[2,32], index: 2, kind: input, shape index: {}]   ;;  %s585_s3 = inlined_call_operand.hbm [shape: f32[2,32,256], index: 3, kind: output, shape index: {}]  }
   0x1   :  { %9 = vsyncpa [#allocation4], 0  ;;  %s465_s12 = smov [#allocation2]  }
   0x2   :  { %s15_s13 = sshll.u32 %s465_s12, 4  ;;  %s16_s13 = int_to_ptr.vmem [resolvable:$true] %s15_s13 }
   0x3   :  { %s429_s14 = scalar_lea.vmem %s16_s13, 2048  ;;  %p434_p1 = scmp.lt.s32.totalorder %s16_s13, %s16_s13 }
   0x4   :  { %p430_p0 = scmp.ne.s32.totalorder %s16_s13, %s429_s14  ;;  %p435_p2 = scmp.lt.s32.totalorder %s429_s14, %s429_s14 }
   0x6   :  { %p436_p3 = por %p435_p2, %p434_p1 }
   0x8   :  { %p437_p4 = pnand %p436_p3, %p430_p0 }
   0xa   :  { %440 = shalt.err (!%p437_p4)
}
   0xb   :  { %s466_s15 = smov 256   ;;  %s467_s16 = smov 16  }
   0xc   :  { %21 = dma.hbm_to_vmem [thread:$0]  %s582_s0, 2048, %s16_s13, [#allocation3], %s466_s15, %s466_s15, %s467_s16  }
   0xd   :  { %461 = dma.done.wait [#allocation3], 2048  }
   0xe   :  { %462 = vsyncadd [#allocation3], 4294965248  ;;  %v497_v0 = vld [vmem:[#allocation2 + $0x40] sm:$0xff]  ;;  %v499_v1 = vld [vmem:[#allocation2 + $0x48] sm:$0xff]  ;;  %v468_v24 = vmov 0.0   ;;  %vm469_vm0 = vmmov 0   ;;  %v90_v29 = vlaneseq }
   0xf   :  { %v501_v2 = vld [vmem:[#allocation2] sm:$0xff]  ;;  %v57_v3 = vadd.f32 %v499_v1, %v497_v0  ;;  %v505_v4 = vld [vmem:[#allocation2 + $0x8] sm:$0xff]  ;;  %v507_v5 = vld [vmem:[#allocation2 + $0x50] sm:$0xff]  ;;  %395 = vmatprep.subr.mxu0 %v468_v24  ;;  %406 = vmatprep.subr.mxu1 %v468_v24  ;;  %vm101_vm1 = vcmask 130112   ;;  %vm108_vm2 = vcmask 195712   ;;  %vm115_vm3 = vcmask 261312  }
  0x10   :  { %v509_v6 = vld [vmem:[#allocation2 + $0x58] sm:$0xff]  ;;  %v45_v7 = vadd.f32 %v505_v4, %v501_v2  ;;  %v513_v8 = vld [vmem:[#allocation2 + $0x10] sm:$0xff]  ;;  %v521_v12 = vld [vmem:[#allocation2 + $0x60] sm:$0xff]  ;;  %403 = vmatprep.mubr.msk.f32.mxu0 %vm469_vm0, %v468_v24  ;;  %408 = vmatprep.mubr.msk.f32.mxu1 %vm469_vm0, %v468_v24  ;;  %v91_v31 = vand.u32 127, %v90_v29  ;;  %v93_v36 = vshrl.u32 %v90_v29, 7  ;;  %vm136_vm4 = vcmask 1041409  }
  0x11   :  { %v515_v9 = vld [vmem:[#allocation2 + $0x18] sm:$0xff]  ;;  %58 = vadd.xlane.f32.xlu1 %v57_v3  ;;  %v60_v10 = vadd.f32 %v509_v6, %v507_v5  ;;  %v523_v13 = vld [vmem:[#allocation2 + $0x68] sm:$0xff]  ;;  %v525_v14 = vld [vmem:[#allocation2 + $0x20] sm:$0xff]  ;;  %vm138_vm5 = vcmask 261120   ;;  %vm217_vm6 = vcmask 1041408   ;;  %vm213_vm7 = vcmask 15360  }
  0x12   :  { %46 = vadd.xlane.f32.xlu0 %v45_v7  ;;  %v48_v11 = vadd.f32 %v515_v9, %v513_v8  ;;  %v527_v15 = vld [vmem:[#allocation2 + $0x28] sm:$0xff]  ;;  %v63_v16 = vadd.f32 %v523_v13, %v521_v12  ;;  %v533_v18 = vld [vmem:[#allocation2 + $0x70] sm:$0xff]  ;;  %v535_v19 = vld [vmem:[#allocation2 + $0x78] sm:$0xff]  ;;  %v96_v33 = vadd.s32 4294967288, %v91_v31  ;;  %v103_v35 = vadd.s32 4294967280, %v91_v31 }
  0x13   :  { %v51_v17 = vadd.f32 %v527_v15, %v525_v14  ;;  %v537_v20 = vld [vmem:[#allocation2 + $0x30] sm:$0xff]  ;;  %v539_v21 = vld [vmem:[#allocation2 + $0x38] sm:$0xff]  ;;  %v66_v22 = vadd.f32 %v535_v19, %v533_v18  ;;  %v79_v27 = vld [vmem:[%s583_s1 + $0x8] sm:$0xff]  ;;  %v110_v40 = vadd.s32 4294967272, %v91_v31  ;;  %v94_v44 = vsub.s32 %v91_v31, %v93_v36 }
  0x14   :  { %v54_v23 = vadd.f32 %v539_v21, %v537_v20  ;;  %v81_v25 = vld [vmem:[%s583_s1 + $0x18] sm:$0xff]  ;;  %v80_v26 = vld [vmem:[%s583_s1 + $0x10] sm:$0xff]  ;;  %v78_v28 = vld [vmem:[%s583_s1] sm:$0xff]  ;;  %v99_v38 = vsub.s32 %v96_v33, %v93_v36  ;;  %v106_v42 = vsub.s32 %v103_v35, %v93_v36  ;;  %v299_v31 = vsub.s32 0, %v93_v36 }
  0x15   :  { %61 = vadd.xlane.f32.xlu1 %v60_v10  ;;  %396 = vmatpush3.msra.mxu0 %v81_v25  ;;  %v113_v51 = vsub.s32 %v110_v40, %v93_v36 }
  0x16   :  { %49 = vadd.xlane.f32.xlu0 %v48_v11  ;;  %397 = vmatprep.subr.mxu0 %v468_v24 }
  0x17   :  { %398 = vmatpush3.msra.mxu0 %v80_v26 }
  0x18   :  { %399 = vmatprep.subr.mxu0 %v468_v24 }
  0x19   :  { %64 = vadd.xlane.f32.xlu1 %v63_v16  ;;  %400 = vmatpush3.msra.mxu0 %v79_v27 }
  0x1a   :  { %52 = vadd.xlane.f32.xlu0 %v51_v17  ;;  %401 = vmatprep.subr.mxu0 %v468_v24 }
  0x1b   :  { %402 = vmatpush3.msra.mxu0 %v78_v28 }
  0x1d   :  { %67 = vadd.xlane.f32.xlu1 %v66_v22  ;;  %v212_v22 = vld [vmem:[%s584_s2] sm:$0x3]  ;;  %s470_s2 = smov [#allocation5]  }
  0x1e   :  { %55 = vadd.xlane.f32.xlu0 %v54_v23  ;;  %407 = vmatpush3.msk.msra.mxu1 %vm217_vm6, %v212_v22  ;;  %s372_s27 = sshll.u32 %s470_s2, 4  ;;  %s373_s27 = int_to_ptr.vmem [resolvable:$true] %s372_s27 }
  0x1f   :  { %s441_s28 = scalar_lea.vmem %s373_s27, 2048  ;;  %p446_p6 = scmp.lt.s32.totalorder %s373_s27, %s373_s27 }
  0x20   :  { %p442_p5 = scmp.ne.s32.totalorder %s373_s27, %s441_s28  ;;  %p447_p7 = scmp.lt.s32.totalorder %s441_s28, %s441_s28 }
  0x22   :  { %p448_p8 = por %p447_p7, %p446_p6 }
  0x24   :  { %p449_p9 = pnand %p448_p8, %p442_p5 }
  0x9a   :  { %v59_v30 = vpop.xlane.xlu1 %58 }
  0x9b   :  { %v47_v32 = vpop.xlane.xlu0 %46  ;;  %v74_v45 = vmul.f32 0.00390625, %v59_v30 }
  0x9c   :  { %v70_v48 = vmul.f32 0.00390625, %v47_v32 }
  0x9d   :  { %v120_v55 = vrot.slane %v74_v45, %v94_v44 }
  0x9e   :  { %v62_v34 = vpop.xlane.xlu1 %61  ;;  %v95_v59 = vrot.slane %v70_v48, %v94_v44 }
  0x9f   :  { %v50_v37 = vpop.xlane.xlu0 %49  ;;  %v75_v39 = vmul.f32 0.00390625, %v62_v34  ;;  %v318_v34 = vsub.s32 1, %v93_v36 }
  0xa0   :  { %v71_v41 = vmul.f32 0.00390625, %v50_v37 }
  0xa1   :  { %v124_v50 = vrot.slane %v75_v39, %v99_v38 }
  0xa2   :  { %v65_v43 = vpop.xlane.xlu1 %64  ;;  %v100_v52 = vrot.slane %v71_v41, %v99_v38 }
  0xa3   :  { %v76_v46 = vmul.f32 0.00390625, %v65_v43  ;;  %v53_v47 = vpop.xlane.xlu0 %52  ;;  %v125_v61 = vsel %vm101_vm1, %v124_v50, %v120_v55 }
  0xa4   :  { %v72_v49 = vmul.f32 0.00390625, %v53_v47  ;;  %v102_v63 = vsel %vm101_vm1, %v100_v52, %v95_v59 }
  0xa5   :  { %v129_v53 = vrot.slane %v76_v46, %v106_v42 }
  0xa6   :  { %v68_v54 = vpop.xlane.xlu1 %67  ;;  %v107_v56 = vrot.slane %v72_v49, %v106_v42 }
  0xa7   :  { %v77_v57 = vmul.f32 0.00390625, %v68_v54  ;;  %v56_v58 = vpop.xlane.xlu0 %55  ;;  %v130_v3 = vsel %vm108_vm2, %v129_v53, %v125_v61 }
  0xa8   :  { %v73_v60 = vmul.f32 0.00390625, %v56_v58  ;;  %v109_v10 = vsel %vm108_vm2, %v107_v56, %v102_v63 }
  0xa9   :  { %v134_v62 = vrot.slane %v77_v57, %v113_v51 }
  0xaa   :  { %v114_v7 = vrot.slane %v73_v60, %v113_v51 }
  0xab   :  { %v135_v11 = vsel %vm115_vm3, %v134_v62, %v130_v3 }
  0xac   :  { %v116_v16 = vsel %vm115_vm3, %v114_v7, %v109_v10 }
  0xad   :  { %v137_v17 = vsel %vm136_vm4, %v135_v11, %v116_v16 }
  0xae   :  { %404 = vmatmul.mubr.msk.f32.vlgmr.msra.gmra.mxu0 %vm138_vm5, %v137_v17 }
 0x16e   :  { %v207_v23 = vpop.f32.mrf.mxu0 }
 0x16f   :  { %v211_v24 = vmax.f32 %v207_v23, 0.0 }
 0x170   :  { %v405_v25 = vpop.f32.mrf.mxu0 }
 0x171   :  { %409 = vmatmul.mubr.msk.f32.vlgmr.msra.gmra.mxu1 %vm213_vm7, %v211_v24 }
 0x231   :  { %v287_v26 = vpop.f32.mrf.mxu1 }
 0x232   :  { %v387_v27 = vmul.f32 -1.442695, %v287_v26 }
 0x233   :  { %v410_v28 = vpop.f32.mrf.mxu1 }
 0x234   :  { %417 = vpow2.f32 %v387_v27 }
 0x241   :  { %v418_v29 = vpop.eup %417 }
 0x242   :  { %v294_v30 = vadd.f32 1.0, %v418_v29 }
 0x244   :  { %419 = vrcp.f32 %v294_v30 }
 0x251   :  { %v420_v32 = vpop.eup %419 }
 0x252   :  { %v300_v33 = vrot.slane %v420_v32, %v299_v31  ;;  %v319_v35 = vrot.slane %v420_v32, %v318_v34 }
 0x254   :  { %306 = vbcast.lane.b32.xlu1 %v300_v33, 264  ;;  %302 = vbcast.lane.b32.xlu0 %v300_v33, 256 }
 0x258   :  { %310 = vbcast.lane.b32.xlu1 %v300_v33, 272  ;;  %321 = vbcast.lane.b32.xlu0 %v319_v35, 256 }
 0x25c   :  { %314 = vbcast.lane.b32.xlu1 %v300_v33, 280  ;;  %329 = vbcast.lane.b32.xlu0 %v319_v35, 272 }
 0x260   :  { %325 = vbcast.lane.b32.xlu1 %v319_v35, 264 }
 0x264   :  { %333 = vbcast.lane.b32.xlu1 %v319_v35, 280 }
 0x2c6   :  { %v307_v37 = vpop.permute.xlu1 %306  ;;  %v303_v38 = vpop.permute.xlu0 %302 }
 0x2c7   :  { %v337_v39 = vmul.f32 %v307_v37, %v513_v8  ;;  %v338_v40 = vmul.f32 %v307_v37, %v515_v9  ;;  %v335_v41 = vmul.f32 %v303_v38, %v501_v2  ;;  %v336_v42 = vmul.f32 %v303_v38, %v505_v4 }
 0x2c9   :  { %353 = vst [vmem:[#allocation5 + $0x10] sm:$0xff] %v337_v39  ;;  %354 = vst [vmem:[#allocation5 + $0x18] sm:$0xff] %v338_v40 }
 0x2ca   :  { %351 = vst [vmem:[#allocation5] sm:$0xff] %v335_v41  ;;  %352 = vst [vmem:[#allocation5 + $0x8] sm:$0xff] %v336_v42  ;;  %v311_v36 = vpop.permute.xlu1 %310  ;;  %v322_v43 = vpop.permute.xlu0 %321 }
 0x2cb   :  { %v339_v44 = vmul.f32 %v311_v36, %v525_v14  ;;  %v340_v45 = vmul.f32 %v311_v36, %v527_v15  ;;  %v343_v46 = vmul.f32 %v322_v43, %v497_v0  ;;  %v344_v8 = vmul.f32 %v322_v43, %v499_v1 }
 0x2cd   :  { %355 = vst [vmem:[#allocation5 + $0x20] sm:$0xff] %v339_v44  ;;  %356 = vst [vmem:[#allocation5 + $0x28] sm:$0xff] %v340_v45 }
 0x2ce   :  { %359 = vst [vmem:[#allocation5 + $0x40] sm:$0xff] %v343_v46  ;;  %360 = vst [vmem:[#allocation5 + $0x48] sm:$0xff] %v344_v8  ;;  %v315_v2 = vpop.permute.xlu1 %314  ;;  %v330_v4 = vpop.permute.xlu0 %329 }
 0x2cf   :  { %v341_v9 = vmul.f32 %v315_v2, %v537_v20  ;;  %v342_v47 = vmul.f32 %v315_v2, %v539_v21  ;;  %v347_v48 = vmul.f32 %v330_v4, %v521_v12  ;;  %v348_v14 = vmul.f32 %v330_v4, %v523_v13 }
 0x2d1   :  { %357 = vst [vmem:[#allocation5 + $0x30] sm:$0xff] %v341_v9  ;;  %358 = vst [vmem:[#allocation5 + $0x38] sm:$0xff] %v342_v47 }
 0x2d2   :  { %363 = vst [vmem:[#allocation5 + $0x60] sm:$0xff] %v347_v48  ;;  %364 = vst [vmem:[#allocation5 + $0x68] sm:$0xff] %v348_v14  ;;  %v326_v0 = vpop.permute.xlu1 %325 }
 0x2d3   :  { %v345_v1 = vmul.f32 %v326_v0, %v507_v5  ;;  %v346_v15 = vmul.f32 %v326_v0, %v509_v6 }
 0x2d5   :  { %361 = vst [vmem:[#allocation5 + $0x50] sm:$0xff] %v345_v1  ;;  %362 = vst [vmem:[#allocation5 + $0x58] sm:$0xff] %v346_v15 }
 0x2d6   :  { %v334_v20 = vpop.permute.xlu1 %333 }
 0x2d7   :  { %v349_v21 = vmul.f32 %v334_v20, %v533_v18  ;;  %v350_v12 = vmul.f32 %v334_v20, %v535_v19 }
 0x2d9   :  { %365 = vst [vmem:[#allocation5 + $0x70] sm:$0xff] %v349_v21  ;;  %366 = vst [vmem:[#allocation5 + $0x78] sm:$0xff] %v350_v12 }
 0x2da   :  { %452 = shalt.err (!%p449_p9)
}
 0x2db   :  { %378 = dma.vmem_to_hbm [thread:$0]  %s373_s27, 2048, %s585_s3, [#allocation4], %s466_s15, %s466_s15, %s467_s16  }
 0x2dc   :  { %463 = dma.done.wait [#allocation4], 2048  }
 0x2dd   :  { %464 = vsyncadd [#allocation4], 4294965248 }
 0x2de   :  { %382 = vsyncpa [#allocation3], 1 }
 0x2df   :  { %383 = vsyncpa [#allocation4], 1 }

</bundles_post_ra>
